<compile_context>
chip_gen: v5e
topology: v5e:2x2
jax: 0.10.0
libtpu: 0.0.40
codegen_flags: <defaults>
</compile_context>

<pallas_src>
import functools
import math

import jax
import jax.numpy as jnp
from jax import lax
from jax.experimental import pallas as pl
from jax.experimental.pallas import tpu as pltpu


def _round_up(n, m):
    return ((n + m - 1) // m) * m


def _cdiv(a, b):
    return (a + b - 1) // b


def _rbf_network_kernel(*refs, num_linear, in_dim, matmul_dtype):
    # refs = (x, centers_t, rbf_w, W0, b0, ..., W{L-1}, b{L-1}, out)
    x_ref, ct_ref, rbfw_ref = refs[:3]
    o_ref = refs[-1]
    lin_refs = refs[3:-1]

    x = x_ref[...].astype(jnp.float32)                  # [bt, in_dim]
    ct = ct_ref[...].astype(jnp.float32)                # [in_dim, nc_p]

    # --- RBF layer (pure VPU, exact f32) -------------------------------------
    # d2[b, o] = sum_k (x[b, k] - centers[o, k])^2
    bt = x.shape[0]
    nc_p = ct.shape[1]
    d2 = jnp.zeros((bt, nc_p), jnp.float32)
    for k in range(in_dim):                             # in_dim is tiny (2): unrolled
        diff = x[:, k:k + 1] - ct[k:k + 1, :]           # [bt, nc_p] via broadcast
        d2 = d2 + diff * diff
    d = jnp.sqrt(d2)

    om = 1.0 - d
    om2 = om * om
    om6 = om2 * om2 * om2
    rbf = om6 * (35.0 * d2 + 18.0 * d + 3.0) * (1.0 / 3.0)
    h = rbf * rbfw_ref[...]                             # [bt, nc_p]

    # --- MLP head (MXU, bf16 operands / f32 accumulation by default) ---------
    for layer in range(num_linear):
        w = lin_refs[2 * layer][...]                    # [in_p, out_p] (pre-transposed)
        b = lin_refs[2 * layer + 1][...]                # [1, out_p], f32
        h = lax.dot_general(
            h.astype(matmul_dtype), w,
            dimension_numbers=(((1,), (0,)), ((), ())),  # contract h-lane with w-sublane
            preferred_element_type=jnp.float32) + b
        if layer < num_linear - 1:
            h = jnp.maximum(h, 0.0)                     # ReLU on all but last

    # Store only the real output columns (out_dim), not the 128-lane padding:
    # cuts the HBM writeback by the padding factor.
    o_ref[...] = h[:, :o_ref.shape[1]].astype(o_ref.dtype)


def prepare_rbf_network_params(centers, rbf_weights, linear_params, *,
                               matmul_dtype=jnp.bfloat16):
    """One-time padding / casting / pre-transposition of all model parameters.

    centers:       [n_centers, in_dim]  (RBF fixed centers)
    rbf_weights:   [n_centers]          (RBF per-feature weights)
    linear_params: list of (W, b), W: [out, in] (PyTorch layout), b: [out]
    """
    n_centers, in_dim = centers.shape
    out_dim = linear_params[-1][0].shape[0]
    num_linear = len(linear_params)
    LANE = 128

    nc_p = _round_up(n_centers, LANE)
    # Centers transposed to [in_dim, nc_p]: lane-dense rows, zero-padded columns
    # (padded centers are killed by rbf_weights == 0 and zero W0 rows).
    centers_t = jnp.zeros((in_dim, nc_p), jnp.float32).at[:, :n_centers].set(
        centers.astype(jnp.float32).T)
    rbfw_p = jnp.zeros((1, nc_p), jnp.float32).at[0, :n_centers].set(
        rbf_weights.astype(jnp.float32))

    flat_params = []
    prev_p = nc_p
    for (w, b) in linear_params:
        o, i = w.shape                                  # PyTorch layout [out, in]
        o_p = _round_up(o, LANE)
        # Pre-transpose to MXU-native RHS layout [in_p, out_p]; zero padding
        # keeps the math exact.
        w_p = (jnp.zeros((prev_p, o_p), jnp.float32)
               .at[:i, :o].set(w.astype(jnp.float32).T)
               .astype(matmul_dtype))
        b_p = jnp.zeros((1, o_p), jnp.float32).at[0, :o].set(b.astype(jnp.float32))
        flat_params.extend([w_p, b_p])
        prev_p = o_p

    return dict(centers_t=centers_t, rbfw=rbfw_p, flat_params=tuple(flat_params),
                in_dim=in_dim, nc_p=nc_p, out_dim=out_dim,
                num_linear=num_linear, matmul_dtype=matmul_dtype)


def rbf_network_forward(x, params, *, batch_tile=None):
    """Fused forward pass of RBFNetwork.  `params` from prepare_rbf_network_params."""
    B, in_dim = x.shape
    assert in_dim == params["in_dim"]
    out_dim = params["out_dim"]
    SUB = 8

    if batch_tile is None:
        # ~half the batch per tile (>= 2 "parallel" grid steps so v7x megacore
        # can shard the batch axis), 8-sublane aligned, capped at 2048 rows.
        # VMEM stays trivially small at any of these sizes -> no vmem override.
        batch_tile = min(_round_up(max(_cdiv(B, 2), SUB), SUB), 2048)
    batch_tile = _round_up(batch_tile, SUB)

    B_p = _round_up(B, batch_tile)
    x_f32 = x.astype(jnp.float32)
    x_p = x_f32 if B_p == B else (
        jnp.zeros((B_p, in_dim), jnp.float32).at[:B].set(x_f32))

    grid = (B_p // batch_tile,)

    in_specs = [
        pl.BlockSpec((batch_tile, in_dim), lambda i: (i, 0)),        # x (batch-tiled)
        pl.BlockSpec(params["centers_t"].shape, lambda i: (0, 0)),   # centers^T (resident)
        pl.BlockSpec(params["rbfw"].shape, lambda i: (0, 0)),        # rbf weights (resident)
    ]
    for p in params["flat_params"]:                                  # W_i^T, b_i (resident)
        in_specs.append(pl.BlockSpec(p.shape, lambda i: (0, 0)))

    # Unpadded output: only out_dim real columns are ever written back to HBM.
    out_specs = pl.BlockSpec((batch_tile, out_dim), lambda i: (i, 0))

    kernel = functools.partial(
        _rbf_network_kernel,
        num_linear=params["num_linear"],
        in_dim=in_dim,
        matmul_dtype=params["matmul_dtype"])

    out = pl.pallas_call(
        kernel,
        out_shape=jax.ShapeDtypeStruct((B_p, out_dim), x.dtype),
        grid_spec=pltpu.PrefetchScalarGridSpec(
            num_scalar_prefetch=0,
            grid=grid,
            in_specs=in_specs,
            out_specs=out_specs,
        ),
        compiler_params=pltpu.CompilerParams(
            dimension_semantics=("parallel",),
        ),
    )(x_p, params["centers_t"], params["rbfw"], *params["flat_params"])

    return out if B_p == B else out[:B]


# ---------------------------------------------------------------------------
# Pure-JAX reference mirroring the PyTorch module exactly.
# ---------------------------------------------------------------------------
def reference_rbf_network(x, centers, rbf_weights, linear_params):
    diff = x[:, None, :] - centers[None, :, :]                       # [B, nc, in]
    d = jnp.sqrt(jnp.sum(diff * diff, axis=2))                       # [B, nc]
    rbf = (1.0 - d) ** 6 * (35.0 * d ** 2 + 18.0 * d + 3.0) / 3.0
    # NOTE: like the PyTorch module, no (1-d)_+ clamp for d > 1.
    h = rbf * rbf_weights
    for layer, (w, b) in enumerate(linear_params):
        h = h @ w.T + b
        if layer < len(linear_params) - 1:
            h = jnp.maximum(h, 0.0)
    return h


def init_linear_params(layer_dims, key):
    """torch.nn.Linear default init: uniform +/- 1/sqrt(fan_in)."""
    params = []
    for fan_in, fan_out in layer_dims:
        key, kw, kb = jax.random.split(key, 3)
        bound = 1.0 / math.sqrt(fan_in)
        w = jax.random.uniform(kw, (fan_out, fan_in), jnp.float32, -bound, bound)
        b = jax.random.uniform(kb, (fan_out,), jnp.float32, -bound, bound)
        params.append((w, b))
    return params


if __name__ == "__main__":
    key = jax.random.PRNGKey(0)

    # Small shapes consistent with the module: 2-D collocation points in [0,1]^2,
    # 64 RBF centers, hidden width 100, scalar output.
    B, in_dim, n_centers, hidden, out_dim = 64, 2, 64, 100, 1

    key, kx, kc, kw = jax.random.split(key, 4)
    x = jax.random.uniform(kx, (B, in_dim), jnp.float32, 0.0, 1.0)
    centers = jax.random.uniform(kc, (n_centers, in_dim), jnp.float32, 0.0, 1.0)
    rbf_weights = jax.random.uniform(kw, (n_centers,), jnp.float32, -1.0, 1.0)

    layer_dims = [(n_centers, hidden), (hidden, hidden), (hidden, hidden),
                  (hidden, hidden), (hidden, out_dim)]
    linear_params = init_linear_params(layer_dims, key)

    ref = reference_rbf_network(x, centers, rbf_weights, linear_params)
    scale = 1.0 + float(jnp.max(jnp.abs(ref)))

    # f32 MLP matmuls: tight numerical check against the reference.
    params_f32 = prepare_rbf_network_params(
        centers, rbf_weights, linear_params, matmul_dtype=jnp.float32)
    out_f32 = jax.block_until_ready(rbf_network_forward(x, params_f32))
    assert out_f32.shape == (B, out_dim)
    err_f32 = float(jnp.max(jnp.abs(out_f32 - ref)))
    assert err_f32 <= 1e-4 * scale, f"f32 mismatch: {err_f32} vs scale {scale}"

    # Default fast path: bf16 MLP matmuls (f32 accumulation) -- looser check.
    params_bf16 = prepare_rbf_network_params(centers, rbf_weights, linear_params)
    out_bf16 = jax.block_until_ready(rbf_network_forward(x, params_bf16))
    assert out_bf16.shape == (B, out_dim)
    err_bf16 = float(jnp.max(jnp.abs(out_bf16 - ref)))
    assert err_bf16 <= 5e-2 * scale, f"bf16 mismatch: {err_bf16} vs scale {scale}"

    print("KERNEL_OK")
</pallas_src>

<mosaic_0001>
module attributes {stable_mosaic.version = 11 : i64} {
  func.func @_rbf_network_kernel(%arg0: i32, %arg1: memref<32x2xf32, #tpu.memory_space<vmem>>, %arg2: memref<2x128xf32, #tpu.memory_space<vmem>>, %arg3: memref<1x128xf32, #tpu.memory_space<vmem>>, %arg4: memref<128x128xf32, #tpu.memory_space<vmem>>, %arg5: memref<1x128xf32, #tpu.memory_space<vmem>>, %arg6: memref<128x128xf32, #tpu.memory_space<vmem>>, %arg7: memref<1x128xf32, #tpu.memory_space<vmem>>, %arg8: memref<128x128xf32, #tpu.memory_space<vmem>>, %arg9: memref<1x128xf32, #tpu.memory_space<vmem>>, %arg10: memref<128x128xf32, #tpu.memory_space<vmem>>, %arg11: memref<1x128xf32, #tpu.memory_space<vmem>>, %arg12: memref<128x128xf32, #tpu.memory_space<vmem>>, %arg13: memref<1x128xf32, #tpu.memory_space<vmem>>, %arg14: memref<32x1xf32, #tpu.memory_space<vmem>>) attributes {dimension_semantics = [#tpu.dimension_semantics<parallel>], iteration_bounds = array<i64: 2>, scalar_prefetch = 0 : i64, scratch_operands = 0 : i64, tpu.core_type = #tpu.core_type<tc>, window_params = [{transform_indices = @transform_0, window_bounds = array<i64: 32, 2>}, {pipeline_mode = #tpu.pipeline_mode<synchronous>, transform_indices = @transform_1, window_bounds = array<i64: 2, 128>}, {pipeline_mode = #tpu.pipeline_mode<synchronous>, transform_indices = @transform_2, window_bounds = array<i64: 1, 128>}, {pipeline_mode = #tpu.pipeline_mode<synchronous>, transform_indices = @transform_3, window_bounds = array<i64: 128, 128>}, {pipeline_mode = #tpu.pipeline_mode<synchronous>, transform_indices = @transform_4, window_bounds = array<i64: 1, 128>}, {pipeline_mode = #tpu.pipeline_mode<synchronous>, transform_indices = @transform_5, window_bounds = array<i64: 128, 128>}, {pipeline_mode = #tpu.pipeline_mode<synchronous>, transform_indices = @transform_6, window_bounds = array<i64: 1, 128>}, {pipeline_mode = #tpu.pipeline_mode<synchronous>, transform_indices = @transform_7, window_bounds = array<i64: 128, 128>}, {pipeline_mode = #tpu.pipeline_mode<synchronous>, transform_indices = @transform_8, window_bounds = array<i64: 1, 128>}, {pipeline_mode = #tpu.pipeline_mode<synchronous>, transform_indices = @transform_9, window_bounds = array<i64: 128, 128>}, {pipeline_mode = #tpu.pipeline_mode<synchronous>, transform_indices = @transform_10, window_bounds = array<i64: 1, 128>}, {pipeline_mode = #tpu.pipeline_mode<synchronous>, transform_indices = @transform_11, window_bounds = array<i64: 128, 128>}, {pipeline_mode = #tpu.pipeline_mode<synchronous>, transform_indices = @transform_12, window_bounds = array<i64: 1, 128>}, {transform_indices = @transform_13, window_bounds = array<i64: 32, 1>}]} {
    %c0 = arith.constant 0 : index
    %c0_0 = arith.constant 0 : index
    %0 = vector.load %arg1[%c0, %c0_0] : memref<32x2xf32, #tpu.memory_space<vmem>>, vector<32x2xf32>
    %c0_1 = arith.constant 0 : index
    %c0_2 = arith.constant 0 : index
    %1 = vector.load %arg2[%c0_1, %c0_2] : memref<2x128xf32, #tpu.memory_space<vmem>>, vector<2x128xf32>
    %cst = arith.constant 0.000000e+00 : f32
    %2 = vector.broadcast %cst : f32 to vector<32x128xf32>
    %3 = vector.extract_strided_slice %0 {offsets = [0, 0], sizes = [32, 1], strides = [1, 1]} : vector<32x2xf32> to vector<32x1xf32>
    %4 = vector.extract_strided_slice %1 {offsets = [0, 0], sizes = [1, 128], strides = [1, 1]} : vector<2x128xf32> to vector<1x128xf32>
    %5 = vector.broadcast %3 : vector<32x1xf32> to vector<32x128xf32>
    %6 = vector.broadcast %4 : vector<1x128xf32> to vector<32x128xf32>
    %7 = arith.subf %5, %6 : vector<32x128xf32>
    %8 = arith.mulf %7, %7 : vector<32x128xf32>
    %9 = arith.addf %2, %8 : vector<32x128xf32>
    %10 = vector.extract_strided_slice %0 {offsets = [0, 1], sizes = [32, 1], strides = [1, 1]} : vector<32x2xf32> to vector<32x1xf32>
    %11 = vector.extract_strided_slice %1 {offsets = [1, 0], sizes = [1, 128], strides = [1, 1]} : vector<2x128xf32> to vector<1x128xf32>
    %12 = vector.broadcast %10 : vector<32x1xf32> to vector<32x128xf32>
    %13 = vector.broadcast %11 : vector<1x128xf32> to vector<32x128xf32>
    %14 = arith.subf %12, %13 : vector<32x128xf32>
    %15 = arith.mulf %14, %14 : vector<32x128xf32>
    %16 = arith.addf %9, %15 : vector<32x128xf32>
    %17 = math.sqrt %16 : vector<32x128xf32>
    %cst_3 = arith.constant 1.000000e+00 : f32
    %18 = vector.broadcast %cst_3 : f32 to vector<32x128xf32>
    %19 = arith.subf %18, %17 : vector<32x128xf32>
    %20 = arith.mulf %19, %19 : vector<32x128xf32>
    %21 = arith.mulf %20, %20 : vector<32x128xf32>
    %22 = arith.mulf %21, %20 : vector<32x128xf32>
    %cst_4 = arith.constant 3.500000e+01 : f32
    %23 = vector.broadcast %cst_4 : f32 to vector<32x128xf32>
    %24 = arith.mulf %23, %16 : vector<32x128xf32>
    %cst_5 = arith.constant 1.800000e+01 : f32
    %25 = vector.broadcast %cst_5 : f32 to vector<32x128xf32>
    %26 = arith.mulf %25, %17 : vector<32x128xf32>
    %27 = arith.addf %24, %26 : vector<32x128xf32>
    %cst_6 = arith.constant 3.000000e+00 : f32
    %28 = vector.broadcast %cst_6 : f32 to vector<32x128xf32>
    %29 = arith.addf %27, %28 : vector<32x128xf32>
    %30 = arith.mulf %22, %29 : vector<32x128xf32>
    %cst_7 = arith.constant 0.333333343 : f32
    %31 = vector.broadcast %cst_7 : f32 to vector<32x128xf32>
    %32 = arith.mulf %30, %31 : vector<32x128xf32>
    %c0_8 = arith.constant 0 : index
    %c0_9 = arith.constant 0 : index
    %33 = vector.load %arg3[%c0_8, %c0_9] : memref<1x128xf32, #tpu.memory_space<vmem>>, vector<1x128xf32>
    %34 = vector.broadcast %33 : vector<1x128xf32> to vector<32x128xf32>
    %35 = arith.mulf %32, %34 : vector<32x128xf32>
    %c0_10 = arith.constant 0 : index
    %c0_11 = arith.constant 0 : index
    %36 = vector.load %arg4[%c0_10, %c0_11] : memref<128x128xf32, #tpu.memory_space<vmem>>, vector<128x128xf32>
    %c0_12 = arith.constant 0 : index
    %c0_13 = arith.constant 0 : index
    %37 = vector.load %arg5[%c0_12, %c0_13] : memref<1x128xf32, #tpu.memory_space<vmem>>, vector<1x128xf32>
    %cst_14 = arith.constant dense<0.000000e+00> : vector<32x128xf32>
    %38 = tpu.matmul %35, %36, %cst_14 {dimension_numbers = #tpu.dot_dimension_numbers<[1], [0], [0], [1], [0, 0, 1, 1], [], []>} : vector<32x128xf32>, vector<128x128xf32>, vector<32x128xf32> -> vector<32x128xf32>
    %39 = vector.broadcast %37 : vector<1x128xf32> to vector<32x128xf32>
    %40 = arith.addf %38, %39 : vector<32x128xf32>
    %cst_15 = arith.constant 0.000000e+00 : f32
    %41 = vector.broadcast %cst_15 : f32 to vector<32x128xf32>
    %42 = arith.maximumf %40, %41 : vector<32x128xf32>
    %c0_16 = arith.constant 0 : index
    %c0_17 = arith.constant 0 : index
    %43 = vector.load %arg6[%c0_16, %c0_17] : memref<128x128xf32, #tpu.memory_space<vmem>>, vector<128x128xf32>
    %c0_18 = arith.constant 0 : index
    %c0_19 = arith.constant 0 : index
    %44 = vector.load %arg7[%c0_18, %c0_19] : memref<1x128xf32, #tpu.memory_space<vmem>>, vector<1x128xf32>
    %cst_20 = arith.constant dense<0.000000e+00> : vector<32x128xf32>
    %45 = tpu.matmul %42, %43, %cst_20 {dimension_numbers = #tpu.dot_dimension_numbers<[1], [0], [0], [1], [0, 0, 1, 1], [], []>} : vector<32x128xf32>, vector<128x128xf32>, vector<32x128xf32> -> vector<32x128xf32>
    %46 = vector.broadcast %44 : vector<1x128xf32> to vector<32x128xf32>
    %47 = arith.addf %45, %46 : vector<32x128xf32>
    %cst_21 = arith.constant 0.000000e+00 : f32
    %48 = vector.broadcast %cst_21 : f32 to vector<32x128xf32>
    %49 = arith.maximumf %47, %48 : vector<32x128xf32>
    %c0_22 = arith.constant 0 : index
    %c0_23 = arith.constant 0 : index
    %50 = vector.load %arg8[%c0_22, %c0_23] : memref<128x128xf32, #tpu.memory_space<vmem>>, vector<128x128xf32>
    %c0_24 = arith.constant 0 : index
    %c0_25 = arith.constant 0 : index
    %51 = vector.load %arg9[%c0_24, %c0_25] : memref<1x128xf32, #tpu.memory_space<vmem>>, vector<1x128xf32>
    %cst_26 = arith.constant dense<0.000000e+00> : vector<32x128xf32>
    %52 = tpu.matmul %49, %50, %cst_26 {dimension_numbers = #tpu.dot_dimension_numbers<[1], [0], [0], [1], [0, 0, 1, 1], [], []>} : vector<32x128xf32>, vector<128x128xf32>, vector<32x128xf32> -> vector<32x128xf32>
    %53 = vector.broadcast %51 : vector<1x128xf32> to vector<32x128xf32>
    %54 = arith.addf %52, %53 : vector<32x128xf32>
    %cst_27 = arith.constant 0.000000e+00 : f32
    %55 = vector.broadcast %cst_27 : f32 to vector<32x128xf32>
    %56 = arith.maximumf %54, %55 : vector<32x128xf32>
    %c0_28 = arith.constant 0 : index
    %c0_29 = arith.constant 0 : index
    %57 = vector.load %arg10[%c0_28, %c0_29] : memref<128x128xf32, #tpu.memory_space<vmem>>, vector<128x128xf32>
    %c0_30 = arith.constant 0 : index
    %c0_31 = arith.constant 0 : index
    %58 = vector.load %arg11[%c0_30, %c0_31] : memref<1x128xf32, #tpu.memory_space<vmem>>, vector<1x128xf32>
    %cst_32 = arith.constant dense<0.000000e+00> : vector<32x128xf32>
    %59 = tpu.matmul %56, %57, %cst_32 {dimension_numbers = #tpu.dot_dimension_numbers<[1], [0], [0], [1], [0, 0, 1, 1], [], []>} : vector<32x128xf32>, vector<128x128xf32>, vector<32x128xf32> -> vector<32x128xf32>
    %60 = vector.broadcast %58 : vector<1x128xf32> to vector<32x128xf32>
    %61 = arith.addf %59, %60 : vector<32x128xf32>
    %cst_33 = arith.constant 0.000000e+00 : f32
    %62 = vector.broadcast %cst_33 : f32 to vector<32x128xf32>
    %63 = arith.maximumf %61, %62 : vector<32x128xf32>
    %c0_34 = arith.constant 0 : index
    %c0_35 = arith.constant 0 : index
    %64 = vector.load %arg12[%c0_34, %c0_35] : memref<128x128xf32, #tpu.memory_space<vmem>>, vector<128x128xf32>
    %c0_36 = arith.constant 0 : index
    %c0_37 = arith.constant 0 : index
    %65 = vector.load %arg13[%c0_36, %c0_37] : memref<1x128xf32, #tpu.memory_space<vmem>>, vector<1x128xf32>
    %cst_38 = arith.constant dense<0.000000e+00> : vector<32x128xf32>
    %66 = tpu.matmul %63, %64, %cst_38 {dimension_numbers = #tpu.dot_dimension_numbers<[1], [0], [0], [1], [0, 0, 1, 1], [], []>} : vector<32x128xf32>, vector<128x128xf32>, vector<32x128xf32> -> vector<32x128xf32>
    %67 = vector.broadcast %65 : vector<1x128xf32> to vector<32x128xf32>
    %68 = arith.addf %66, %67 : vector<32x128xf32>
    %69 = vector.extract_strided_slice %68 {offsets = [0, 0], sizes = [32, 1], strides = [1, 1]} : vector<32x128xf32> to vector<32x1xf32>
    %c0_39 = arith.constant 0 : index
    %c0_40 = arith.constant 0 : index
    %70 = vector.load %arg14[%c0_39, %c0_40] : memref<32x1xf32, #tpu.memory_space<vmem>>, vector<32x1xf32>
    tpu.vector_store %arg14[%c0_39, %c0_40], %69 {strides = array<i32>} : memref<32x1xf32, #tpu.memory_space<vmem>>, vector<32x1xf32>,
    return
  }
  func.func @transform_0(%arg0: i32) -> (i32, i32) {
    %c0_i32 = arith.constant 0 : i32
    %c0_i32_0 = arith.constant 0 : i32
    return %arg0, %c0_i32 : i32, i32
  }
  func.func @transform_1(%arg0: i32) -> (i32, i32) {
    %c0_i32 = arith.constant 0 : i32
    %c0_i32_0 = arith.constant 0 : i32
    %c0_i32_1 = arith.constant 0 : i32
    return %c0_i32, %c0_i32_0 : i32, i32
  }
  func.func @transform_2(%arg0: i32) -> (i32, i32) {
    %c0_i32 = arith.constant 0 : i32
    %c0_i32_0 = arith.constant 0 : i32
    %c0_i32_1 = arith.constant 0 : i32
    return %c0_i32, %c0_i32_0 : i32, i32
  }
  func.func @transform_3(%arg0: i32) -> (i32, i32) {
    %c0_i32 = arith.constant 0 : i32
    %c0_i32_0 = arith.constant 0 : i32
    %c0_i32_1 = arith.constant 0 : i32
    return %c0_i32, %c0_i32_0 : i32, i32
  }
  func.func @transform_4(%arg0: i32) -> (i32, i32) {
    %c0_i32 = arith.constant 0 : i32
    %c0_i32_0 = arith.constant 0 : i32
    %c0_i32_1 = arith.constant 0 : i32
    return %c0_i32, %c0_i32_0 : i32, i32
  }
  func.func @transform_5(%arg0: i32) -> (i32, i32) {
    %c0_i32 = arith.constant 0 : i32
    %c0_i32_0 = arith.constant 0 : i32
    %c0_i32_1 = arith.constant 0 : i32
    return %c0_i32, %c0_i32_0 : i32, i32
  }
  func.func @transform_6(%arg0: i32) -> (i32, i32) {
    %c0_i32 = arith.constant 0 : i32
    %c0_i32_0 = arith.constant 0 : i32
    %c0_i32_1 = arith.constant 0 : i32
    return %c0_i32, %c0_i32_0 : i32, i32
  }
  func.func @transform_7(%arg0: i32) -> (i32, i32) {
    %c0_i32 = arith.constant 0 : i32
    %c0_i32_0 = arith.constant 0 : i32
    %c0_i32_1 = arith.constant 0 : i32
    return %c0_i32, %c0_i32_0 : i32, i32
  }
  func.func @transform_8(%arg0: i32) -> (i32, i32) {
    %c0_i32 = arith.constant 0 : i32
    %c0_i32_0 = arith.constant 0 : i32
    %c0_i32_1 = arith.constant 0 : i32
    return %c0_i32, %c0_i32_0 : i32, i32
  }
  func.func @transform_9(%arg0: i32) -> (i32, i32) {
    %c0_i32 = arith.constant 0 : i32
    %c0_i32_0 = arith.constant 0 : i32
    %c0_i32_1 = arith.constant 0 : i32
    return %c0_i32, %c0_i32_0 : i32, i32
  }
  func.func @transform_10(%arg0: i32) -> (i32, i32) {
    %c0_i32 = arith.constant 0 : i32
    %c0_i32_0 = arith.constant 0 : i32
    %c0_i32_1 = arith.constant 0 : i32
    return %c0_i32, %c0_i32_0 : i32, i32
  }
  func.func @transform_11(%arg0: i32) -> (i32, i32) {
    %c0_i32 = arith.constant 0 : i32
    %c0_i32_0 = arith.constant 0 : i32
    %c0_i32_1 = arith.constant 0 : i32
    return %c0_i32, %c0_i32_0 : i32, i32
  }
  func.func @transform_12(%arg0: i32) -> (i32, i32) {
    %c0_i32 = arith.constant 0 : i32
    %c0_i32_0 = arith.constant 0 : i32
    %c0_i32_1 = arith.constant 0 : i32
    return %c0_i32, %c0_i32_0 : i32, i32
  }
  func.func @transform_13(%arg0: i32) -> (i32, i32) {
    %c0_i32 = arith.constant 0 : i32
    %c0_i32_0 = arith.constant 0 : i32
    return %arg0, %c0_i32 : i32, i32
  }
}

</mosaic_0001>

<bundles_post_ra>
// kernel: tpu_custom_call.1
= control target key start
LH: loop header
LB: loop body
LE: loop exit
PB: predicated region body
PF: predicated region fallthrough
CT: control target
= control target key end

     0   :  { %s1612_s0 = inlined_call_operand.vmem [shape: f32[64,2], index: 0, kind: input, shape index: {}]   ;;  %s1613_s1 = inlined_call_operand.vmem [shape: f32[2,128], index: 1, kind: input, shape index: {}]   ;;  %s1614_s2 = inlined_call_operand.vmem [shape: f32[1,128], index: 2, kind: input, shape index: {}]   ;;  %s1615_s3 = inlined_call_operand.hbm [shape: f32[128,128], index: 3, kind: input, shape index: {}]   ;;  %s1616_s4 = inlined_call_operand.vmem [shape: f32[1,128], index: 4, kind: input, shape index: {}]   ;;  %s1617_s5 = inlined_call_operand.hbm [shape: f32[128,128], index: 5, kind: input, shape index: {}]   ;;  %s1618_s6 = inlined_call_operand.vmem [shape: f32[1,128], index: 6, kind: input, shape index: {}]   ;;  %s1619_s7 = inlined_call_operand.hbm [shape: f32[128,128], index: 7, kind: input, shape index: {}]   ;;  %s1620_s8 = inlined_call_operand.vmem [shape: f32[1,128], index: 8, kind: input, shape index: {}]   ;;  %s1621_s9 = inlined_call_operand.hbm [shape: f32[128,128], index: 9, kind: input, shape index: {}]   ;;  %s1622_s10 = inlined_call_operand.vmem [shape: f32[1,128], index: 10, kind: input, shape index: {}]   ;;  %s1623_s11 = inlined_call_operand.hbm [shape: f32[128,128], index: 11, kind: input, shape index: {}]   ;;  %s1624_s12 = inlined_call_operand.vmem [shape: f32[1,128], index: 12, kind: input, shape index: {}]   ;;  %s1625_s13 = inlined_call_operand.vmem [shape: f32[64,1], index: 13, kind: output, shape index: {}]  }
   0x1   :  { %1627 = sst [smem:[#allocation13_spill]] %s1615_s3 }
   0x2   :  { %1628 = sst [smem:[#allocation14_spill]] %s1617_s5 }
   0x3   :  { %1629 = sst [smem:[#allocation15_spill]] %s1621_s9 }
   0x4   :  { %18 = vsyncpa [#allocation3], 0 }
   0x5   :  { %19 = vsyncpa [#allocation5], 0 }
   0x6   :  { %20 = vsyncpa [#allocation8], 0  ;;  %s1464_s25 = smov 0  }
   0x7 LB: > { %s1626_s26 = sadd.s32 4294967295, %s1383_s25   ;;  %p1064_p0 = scmp.ge.s32.totalorder %s1383_s25, 1  ;;  %s1383_s25 = sphi %s1464_s25, %s26_s25  }
   0x8   : > { %p335_p1 = scmp.lt.s32.totalorder %s1383_s25, 3  ;;  %p1474_p2 = scmp.eq.s32.totalorder %s1626_s26, 0 }
   0x9   : > { %s1631_s5 = sld [smem:[#allocation14_spill]]  ;;  %s1385_s18 = smov [#allocation4]  }
   0xa   : > { %p1481_p3 = pnand %p1064_p0, %p335_p1  ;;  %s1633_s9 = sld [smem:[#allocation15_spill]] }
   0xb   : > { %s371_s19 = sshll.u32 %s1385_s18, 4  ;;  %s1386_s21 = smov [#allocation7]   ;;  %s372_s19 = int_to_ptr.vmem [resolvable:$true] %s371_s19 }
   0xc   : > { %p1151_p4 = pneg %p1481_p3  ;;  %s405_s22 = sshll.u32 %s1386_s21, 4  ;;  %s406_s22 = int_to_ptr.vmem [resolvable:$true] %s405_s22 }
   0xd   : > { %s1635_s3 = sld [smem:[#allocation13_spill]]  ;;  %s1387_s29 = smov 128  }
   0xe   : > { %p1492_p5 = pnand %p1474_p2, %p1151_p4  ;;  %s1388_s15 = smov 8  }
   0xf   : > { %s369_s30 = sshll.u32 %s1631_s5, 4  ;;  %s1389_s16 = smov [#allocation2]   ;;  %s370_s30 = int_to_ptr.hbm [resolvable:$true] %s369_s30 }
  0x10   : > { %s403_s17 = sshll.u32 %s1633_s9, 4  ;;  %s354_s18 = sshll.u32 %s1389_s16, 4  ;;  %s404_s17 = int_to_ptr.hbm [resolvable:$true] %s403_s17  ;;  %s355_s18 = int_to_ptr.vmem [resolvable:$true] %s354_s18 }
  0x11   : > { %1157 = dma.hbm_to_vmem [thread:$0]  (!%p1492_p5), %s370_s30, 2048, %s372_s19, [#allocation5], %s1387_s29, %s1387_s29, %s1388_s15  }
  0x12   : > { %1163 = dma.hbm_to_vmem [thread:$0]  (!%p1492_p5), %s404_s17, 2048, %s406_s22, [#allocation8], %s1387_s29, %s1387_s29, %s1388_s15  }
  0x13   : > { %s352_s28 = sshll.u32 %s1635_s3, 4  ;;  %s386_s21 = sshll.u32 %s1619_s7, 4  ;;  %s353_s28 = int_to_ptr.hbm [resolvable:$true] %s352_s28  ;;  %s387_s21 = int_to_ptr.hbm [resolvable:$true] %s386_s21 }
  0x14   : > { %1154 = dma.hbm_to_vmem [thread:$0]  (!%p1492_p5), %s353_s28, 2048, %s355_s18, [#allocation3], %s1387_s29, %s1387_s29, %s1388_s15  }
  0x15   : > { %s420_s3 = sshll.u32 %s1623_s11, 4  ;;  %s1390_s9 = smov [#allocation6]   ;;  %s421_s3 = int_to_ptr.hbm [resolvable:$true] %s420_s3 }
  0x16   : > { %s388_s30 = sshll.u32 %s1390_s9, 4  ;;  %s1391_s17 = smov [#allocation9]   ;;  %s389_s30 = int_to_ptr.vmem [resolvable:$true] %s388_s30 }
  0x17   : > { %1160 = dma.hbm_to_vmem [thread:$0]  (!%p1492_p5), %s387_s21, 2048, %s389_s30, [#allocation5], %s1387_s29, %s1387_s29, %s1388_s15  }
  0x18   : > { %s422_s19 = sshll.u32 %s1391_s17, 4  ;;  %450 = sbr.rel (%p1481_p3) target bundleno = 898 (0x382), region = 72  ;;  %s423_s19 = int_to_ptr.vmem [resolvable:$true] %s422_s19 }
  0x19   : > { %1166 = dma.hbm_to_vmem [thread:$0]  (!%p1492_p5), %s421_s3, 2048, %s423_s19, [#allocation8], %s1387_s29, %s1387_s29, %s1388_s15  }
  0x1d   : > { %1370 = dma.done.wait (%p1474_p2), [#allocation3], 2048  }
  0x1e   : > { %1372 = vsyncadd (%p1474_p2), [#allocation3], 4294965248 }
  0x1f   : > { %1374 = dma.done.wait (%p1474_p2), [#allocation5], 4096  }
  0x20   : > { %1376 = vsyncadd (%p1474_p2), [#allocation5], 4294963200 }
  0x21   : > { %1378 = dma.done.wait (%p1474_p2), [#allocation8], 4096  }
  0x22   : > { %1380 = vsyncadd (%p1474_p2), [#allocation8], 4294963200  ;;  %s1636_s3 = sadd.s32 4294967295, %s1383_s25   ;;  %v1392_v0 = vmov 0   ;;  %v1393_v4 = vmov 1   ;;  %v705_v11 = vld [vmem:[#allocation2 + $0x78] sm:$0xff] }
  0x23   : > { %s1077_s5 = sshll.u32 %s1636_s3, 2  ;;  %1196 = vset.pattern.permute.xlu1 %v1392_v0  ;;  %1194 = vset.pattern.permute.xlu0 %v1392_v0  ;;  %v531_v7 = vld [vmem:[%s1613_s1] sm:$0x3]  ;;  %v704_v14 = vld [vmem:[#allocation2 + $0x70] sm:$0xff]  ;;  %v703_v15 = vld [vmem:[#allocation2 + $0x68] sm:$0xff]  ;;  %vm951_vm8 = vcmask 7168  }
  0x24   : > { %p516_p6 = scmp.lt.s32.totalorder %s1077_s5, 7  ;;  %1198 = vset.pattern.permute.xlu2 %v1392_v0  ;;  %v1542_v8 = vperm.slane %v531_v7, 0  ;;  %v581_v9 = vperm.slane %v531_v7, 1  ;;  %710 = vmatpush.msra.mxu0 %v705_v11  ;;  %v702_v16 = vld [vmem:[#allocation2 + $0x60] sm:$0xff]  ;;  %v701_v19 = vld [vmem:[#allocation2 + $0x58] sm:$0xff]  ;;  %v700_v20 = vld [vmem:[#allocation2 + $0x50] sm:$0xff] }
  0x25   : > { %v699_v22 = vld [vmem:[#allocation2 + $0x48] sm:$0xff]  ;;  %v698_v23 = vld [vmem:[#allocation2 + $0x40] sm:$0xff]  ;;  %v697_v26 = vld [vmem:[#allocation2 + $0x38] sm:$0xff] }
  0x26   : > { %s1638_s5 = smov (!%p516_p6, %s1077_s5), 7  ;;  %711 = vmatpush.msra.mxu0 %v704_v14  ;;  %v696_v27 = vld [vmem:[#allocation2 + $0x30] sm:$0xff]  ;;  %v695_v28 = vld [vmem:[#allocation2 + $0x28] sm:$0xff]  ;;  %v694_v31 = vld [vmem:[#allocation2 + $0x20] sm:$0xff] }
  0x27   : > { %s1078_s9 = sshll.u32 %s1638_s5, 3  ;;  %v693_v35 = vld [vmem:[#allocation2 + $0x18] sm:$0xff]  ;;  %v692_v40 = vld [vmem:[#allocation2 + $0x10] sm:$0xff]  ;;  %v691_v45 = vld [vmem:[#allocation2 + $0x8] sm:$0xff] }
  0x28   : > { %s519_s20 = scalar_lea.vmem %s1612_s0, %s1078_s9  ;;  %712 = vmatpush.msra.mxu0 %v703_v15  ;;  %v690_v50 = vld [vmem:[#allocation2] sm:$0xff] }
  0x29   : > { %v528_v1 = vld [vmem:[%s519_s20 + $0x8] sm:$0xff]  ;;  %v527_v2 = vld [vmem:[%s519_s20] sm:$0xff]  ;;  %v529_v3 = vld [vmem:[%s519_s20 + $0x10] sm:$0xff] }
  0x2a   : > { %539 = vperm.xlu1 %1196, %v528_v1   ;;  %534 = vperm.xlu0 %1194, %v527_v2   ;;  %v530_v5 = vld [vmem:[%s519_s20 + $0x18] sm:$0xff]  ;;  %s525_s20 = scalar_lea.vmem %s1625_s13, %s1078_s9 }
  0x2b   : > { %544 = vperm.xlu2 %1198, %v529_v3   ;;  %713 = vmatpush.msra.mxu0 %v702_v16 }
  0x2d   : > { %714 = vmatpush.msra.mxu0 %v701_v19 }
  0x2f   : > { %715 = vmatpush.msra.mxu0 %v700_v20 }
  0x31   : > { %716 = vmatpush.msra.mxu0 %v699_v22 }
  0x32   : > { %1197 = vset.pattern.permute.xlu1 %v1393_v4  ;;  %1195 = vset.pattern.permute.xlu0 %v1393_v4 }
  0x33   : > { %570 = vperm.xlu1 %1197, %v528_v1   ;;  %566 = vperm.xlu0 %1195, %v527_v2  }
  0x34   : > { %1199 = vset.pattern.permute.xlu2 %v1393_v4  ;;  %717 = vmatpush.msra.mxu0 %v698_v23 }
  0x35   : > { %574 = vperm.xlu2 %1199, %v529_v3  }
  0x36   : > { %718 = vmatpush.msra.mxu0 %v697_v26 }
  0x38   : > { %719 = vmatpush.msra.mxu0 %v696_v27 }
  0x3a   : > { %720 = vmatpush.msra.mxu0 %v695_v28 }
  0x3b   : > { %1200 = vset.pattern.permute.xlu1 %v1392_v0 }
  0x3c   : > { %549 = vperm.xlu1 %1200, %v530_v5   ;;  %721 = vmatpush.msra.mxu0 %v694_v31 }
  0x3d   : > { %578 = vperm.xlu2 %1199, %v530_v5  }
  0x3e   : > { %722 = vmatpush.msra.mxu0 %v693_v35 }
  0x40   : > { %723 = vmatpush.msra.mxu0 %v692_v40 }
  0x42   : > { %724 = vmatpush.msra.mxu0 %v691_v45 }
  0x44   : > { %725 = vmatpush.msra.mxu0 %v690_v50 }
  0x85   : > { %v545_v6 = vpop.permute.xlu2 %544 }
  0x86   : > { %v555_v12 = vsub.f32 %v545_v6, %v1542_v8 }
  0x88   : > { %v559_v17 = vmul.f32 %v555_v12, %v555_v12 }
  0x8f   : > { %v575_v10 = vpop.permute.xlu2 %574 }
  0x90   : > { %v584_v13 = vsub.f32 %v575_v10, %v581_v9 }
  0x92   : > { %v588_v18 = vmul.f32 %v584_v13, %v584_v13 }
  0x94   : > { %v1545_v21 = vadd.f32 %v588_v18, %v559_v17 }
  0x96   : > { %1207 = vrsqrt.f32 %v1545_v21  ;;  %vm625_vm0 = vcmp.eq.f32.partialorder %v1545_v21, inf  ;;  %vm627_vm1 = vcmp.eq.f32.partialorder %v1545_v21, 0.0  ;;  %v628_v12 = vand.u32 2147483648, %v1545_v21 }
  0x97   : > { %v579_v44 = vpop.permute.xlu2 %578 }
  0x98   : > { %v585_v49 = vsub.f32 %v579_v44, %v581_v9  ;;  %v660_v44 = vmul.f32 35.0, %v1545_v21 }
  0x9a   : > { %v589_v53 = vmul.f32 %v585_v49, %v585_v49 }
  0x9c   : > { %v535_v24 = vpop.permute.xlu0 %534  ;;  %v540_v25 = vpop.permute.xlu1 %539 }
  0x9d   : > { %v1208_v29 = vpop.eup %1207  ;;  %v554_v30 = vsub.f32 %v540_v25, %v1542_v8  ;;  %v553_v32 = vsub.f32 %v535_v24, %v1542_v8 }
  0x9e   : > { %v619_v36 = vmul.f32 %v1208_v29, %v1545_v21 }
  0x9f   : > { %v558_v37 = vmul.f32 %v554_v30, %v554_v30  ;;  %v557_v41 = vmul.f32 %v553_v32, %v553_v32 }
  0xa0   : > { %v620_v46 = vmul.f32 %v1208_v29, %v619_v36 }
  0xa2   : > { %v621_v51 = vmul.f32 0.5, %v620_v46 }
  0xa4   : > { %v622_v56 = vsub.f32 1.5, %v621_v51  ;;  %v756_v51 = vld [vmem:[#allocation4 + $0x68] sm:$0xff] }
  0xa5   : > { %v571_v33 = vpop.permute.xlu1 %570  ;;  %v567_v34 = vpop.permute.xlu0 %566 }
  0xa6   : > { %v583_v38 = vsub.f32 %v571_v33, %v581_v9  ;;  %v582_v39 = vsub.f32 %v567_v34, %v581_v9  ;;  %v623_v63 = vmul.f32 %v1208_v29, %v622_v56 }
  0xa8   : > { %v587_v42 = vmul.f32 %v583_v38, %v583_v38  ;;  %v586_v43 = vmul.f32 %v582_v39, %v582_v39  ;;  %v624_v4 = vmul.f32 %v623_v63, %v1545_v21  ;;  %v753_v63 = vld [vmem:[#allocation4 + $0x50] sm:$0xff] }
  0xaa   : > { %v1551_v47 = vadd.f32 %v587_v42, %v558_v37  ;;  %v590_v48 = vadd.f32 %v586_v43, %v557_v41  ;;  %v626_v11 = vsel %vm625_vm0, %v1545_v21, %v624_v4  ;;  %v758_v42 = vld [vmem:[#allocation4 + $0x78] sm:$0xff]  ;;  %v757_v43 = vld [vmem:[#allocation4 + $0x70] sm:$0xff]  ;;  %v752_v4 = vld [vmem:[#allocation4 + $0x48] sm:$0xff] }
  0xab   : > { %v629_v27 = vsel %vm627_vm1, %v628_v12, %v626_v11  ;;  %763 = vmatpush.msra.mxu1 %v758_v42  ;;  %v750_v11 = vld [vmem:[#allocation4 + $0x38] sm:$0xff] }
  0xac   : > { %1209 = vrsqrt.f32 %v590_v48  ;;  %vm601_vm2 = vcmp.eq.f32.partialorder %v590_v48, inf  ;;  %v604_v13 = vand.u32 2147483648, %v590_v48  ;;  %vm603_vm3 = vcmp.eq.f32.partialorder %v590_v48, 0.0  ;;  %v803_v42 = vld [vmem:[#allocation6 + $0x38] sm:$0xff] }
  0xad   : > { %1211 = vrsqrt.f32 %v1551_v47  ;;  %vm613_vm4 = vcmp.eq.f32.partialorder %v1551_v47, inf  ;;  %v616_v17 = vand.u32 2147483648, %v1551_v47  ;;  %vm615_vm5 = vcmp.eq.f32.partialorder %v1551_v47, 0.0  ;;  %764 = vmatpush.msra.mxu1 %v757_v43  ;;  %v802_v43 = vld [vmem:[#allocation6 + $0x30] sm:$0xff] }
  0xae   : > { %v550_v52 = vpop.permute.xlu1 %549  ;;  %v658_v23 = vmul.f32 35.0, %v590_v48  ;;  %v659_v35 = vmul.f32 35.0, %v1551_v47  ;;  %v644_v36 = vsub.f32 1.0, %v629_v27  ;;  %v664_v45 = vmul.f32 18.0, %v629_v27  ;;  %v1202_v27 = vld [vmem:[%s1616_s4] ss:$0 sm:$0xff] }
  0xaf   : > { %v556_v54 = vsub.f32 %v550_v52, %v1542_v8  ;;  %765 = vmatpush.msra.mxu1 %v756_v51 }
  0xb0   : > { %v648_v50 = vmul.f32 %v644_v36, %v644_v36  ;;  %v668_v56 = vadd.f32 %v664_v45, %v660_v44  ;;  %v806_v36 = vld [vmem:[#allocation6 + $0x50] sm:$0xff]  ;;  %v801_v44 = vld [vmem:[#allocation6 + $0x28] sm:$0xff] }
  0xb1   : > { %v560_v55 = vmul.f32 %v556_v54, %v556_v54  ;;  %v1201_v54 = vld [vmem:[%s1614_s2] ss:$0 sm:$0xff] }
  0xb2   : > { %v1210_v57 = vpop.eup %1209 }
  0xb3   : > { %v1212_v58 = vpop.eup %1211  ;;  %v1555_v59 = vadd.f32 %v589_v53, %v560_v55  ;;  %v595_v60 = vmul.f32 %v1210_v57, %v590_v48  ;;  %v755_v55 = vld [vmem:[#allocation4 + $0x60] sm:$0xff] }
  0xb4   : > { %v607_v61 = vmul.f32 %v1212_v58, %v1551_v47  ;;  %766 = vmatpush.msra.mxu1 %v755_v55  ;;  %v1203_v55 = vld [vmem:[%s1618_s6] ss:$0 sm:$0xff] }
  0xb5   : > { %v596_v62 = vmul.f32 %v1210_v57, %v595_v60  ;;  %1213 = vrsqrt.f32 %v1555_v59  ;;  %vm637_vm6 = vcmp.eq.f32.partialorder %v1555_v59, inf  ;;  %vm639_vm7 = vcmp.eq.f32.partialorder %v1555_v59, 0.0 }
  0xb6   : > { %v608_v0 = vmul.f32 %v1212_v58, %v607_v61  ;;  %v652_v60 = vmul.f32 %v648_v50, %v648_v50 }
  0xb7   : > { %v597_v1 = vmul.f32 0.5, %v596_v62  ;;  %v754_v62 = vld [vmem:[#allocation4 + $0x58] sm:$0xff] }
  0xb8   : > { %v609_v2 = vmul.f32 0.5, %v608_v0  ;;  %767 = vmatpush.msra.mxu1 %v754_v62  ;;  %v861_v62 = vld [vmem:[#allocation7 + $0x60] sm:$0xff] }
  0xb9   : > { %v598_v3 = vsub.f32 1.5, %v597_v1  ;;  %v656_v1 = vmul.f32 %v652_v60, %v648_v50 }
  0xba   : > { %v610_v5 = vsub.f32 1.5, %v609_v2  ;;  %v672_v2 = vadd.f32 3.0, %v668_v56  ;;  %768 = vmatpush.msra.mxu1 %v753_v63  ;;  %v864_v56 = vld [vmem:[#allocation7 + $0x78] sm:$0xff] }
  0xbb   : > { %v1214_v6 = vpop.eup %1213  ;;  %v599_v7 = vmul.f32 %v1210_v57, %v598_v3  ;;  %869 = vmatpush.msra.mxu3 %v864_v56 }
  0xbc   : > { %v611_v8 = vmul.f32 %v1212_v58, %v610_v5  ;;  %v631_v9 = vmul.f32 %v1214_v6, %v1555_v59  ;;  %769 = vmatpush.msra.mxu1 %v752_v4 }
  0xbd   : > { %v600_v10 = vmul.f32 %v599_v7, %v590_v48 }
  0xbe   : > { %v612_v14 = vmul.f32 %v611_v8, %v1551_v47  ;;  %v632_v15 = vmul.f32 %v1214_v6, %v631_v9  ;;  %v676_v8 = vmul.f32 %v672_v2, %v656_v1  ;;  %v859_v1 = vld [vmem:[#allocation7 + $0x50] sm:$0xff]  ;;  %v858_v2 = vld [vmem:[#allocation7 + $0x48] sm:$0xff] }
  0xbf   : > { %v602_v16 = vsel %vm601_vm2, %v590_v48, %v600_v10  ;;  %v640_v48 = vand.u32 2147483648, %v1555_v59  ;;  %v661_v10 = vmul.f32 35.0, %v1555_v59 }
  0xc0   : > { %v605_v18 = vsel %vm603_vm3, %v604_v13, %v602_v16  ;;  %v614_v19 = vsel %vm613_vm4, %v1551_v47, %v612_v14  ;;  %v633_v20 = vmul.f32 0.5, %v632_v15  ;;  %v749_v13 = vld [vmem:[#allocation4 + $0x30] sm:$0xff]  ;;  %v680_v14 = vmul.f32 0.33333334, %v676_v8  ;;  %v748_v16 = vld [vmem:[#allocation4 + $0x28] sm:$0xff] }
  0xc1   : > { %v642_v22 = vsub.f32 1.0, %v605_v18  ;;  %v662_v24 = vmul.f32 18.0, %v605_v18  ;;  %v617_v25 = vsel %vm615_vm5, %v616_v17, %v614_v19  ;;  %v747_v18 = vld [vmem:[#allocation4 + $0x20] sm:$0xff]  ;;  %v855_v8 = vld [vmem:[#allocation7 + $0x30] sm:$0xff] }
  0xc2   : > { %v643_v26 = vsub.f32 1.0, %v617_v25  ;;  %v634_v28 = vsub.f32 1.5, %v633_v20  ;;  %v663_v31 = vmul.f32 18.0, %v617_v25  ;;  %v688_v19 = vmul.f32 %v1201_v54, %v680_v14  ;;  %v744_v25 = vld [vmem:[#allocation4 + $0x8] sm:$0xff]  ;;  %v852_v14 = vld [vmem:[#allocation7 + $0x18] sm:$0xff] }
  0xc3   : > { %v646_v29 = vmul.f32 %v642_v22, %v642_v22  ;;  %v666_v30 = vadd.f32 %v662_v24, %v658_v23  ;;  %v746_v22 = vld [vmem:[#allocation4 + $0x18] sm:$0xff]  ;;  %v745_v24 = vld [vmem:[#allocation4 + $0x10] sm:$0xff] }
  0xc4   : > { %v647_v32 = vmul.f32 %v643_v26, %v643_v26  ;;  %v635_v33 = vmul.f32 %v1214_v6, %v634_v28  ;;  %v667_v41 = vadd.f32 %v663_v31, %v659_v35  ;;  %v751_v6 = vld [vmem:[#allocation4 + $0x40] sm:$0xff]  ;;  %v811_v28 = vld [vmem:[#allocation6 + $0x78] sm:$0xff] }
  0xc5   : > { %v650_v34 = vmul.f32 %v646_v29, %v646_v29  ;;  %v670_v40 = vadd.f32 3.0, %v666_v30  ;;  %770 = vmatpush.msra.mxu1 %v751_v6  ;;  %v743_v26 = vld [vmem:[#allocation4] sm:$0xff]  ;;  %816 = vmatpush.msra.mxu2 %v811_v28  ;;  %v809_v30 = vld [vmem:[#allocation6 + $0x68] sm:$0xff]  ;;  %v807_v35 = vld [vmem:[#allocation6 + $0x58] sm:$0xff] }
  0xc6   : > { %v651_v37 = vmul.f32 %v647_v32, %v647_v32  ;;  %v636_v38 = vmul.f32 %v635_v33, %v1555_v59  ;;  %v671_v21 = vadd.f32 3.0, %v667_v41  ;;  %v808_v33 = vld [vmem:[#allocation6 + $0x60] sm:$0xff] }
  0xc7   : > { %v654_v39 = vmul.f32 %v650_v34, %v646_v29  ;;  %771 = vmatpush.msra.mxu1 %v750_v11  ;;  %v810_v29 = vld [vmem:[#allocation6 + $0x70] sm:$0xff] }
  0xc8   : > { %v638_v46 = vsel %vm637_vm6, %v1555_v59, %v636_v38  ;;  %v655_v49 = vmul.f32 %v651_v37, %v647_v32  ;;  %817 = vmatpush.msra.mxu2 %v810_v29  ;;  %v805_v37 = vld [vmem:[#allocation6 + $0x48] sm:$0xff]  ;;  %v913_v29 = vld [vmem:[#allocation9 + $0x58] sm:$0xff] }
  0xc9   : > { %v674_v47 = vmul.f32 %v670_v40, %v654_v39  ;;  %v641_v52 = vsel %vm639_vm7, %v640_v48, %v638_v46  ;;  %772 = vmatpush.msra.mxu1 %v749_v13  ;;  %v804_v40 = vld [vmem:[#allocation6 + $0x40] sm:$0xff] }
  0xca   : > { %v675_v58 = vmul.f32 %v671_v21, %v655_v49  ;;  %v645_v61 = vsub.f32 1.0, %v641_v52  ;;  %v665_v5 = vmul.f32 18.0, %v641_v52  ;;  %818 = vmatpush.msra.mxu2 %v809_v30  ;;  %v800_v48 = vld [vmem:[#allocation6 + $0x20] sm:$0xff]  ;;  %v799_v49 = vld [vmem:[#allocation6 + $0x18] sm:$0xff]  ;;  %v912_v30 = vld [vmem:[#allocation9 + $0x50] sm:$0xff] }
  0xcb   : > { %v678_v53 = vmul.f32 0.33333334, %v674_v47  ;;  %773 = vmatpush.msra.mxu1 %v748_v16  ;;  %v796_v21 = vld [vmem:[#allocation6] sm:$0xff] }
  0xcc   : > { %v679_v0 = vmul.f32 0.33333334, %v675_v58  ;;  %v649_v3 = vmul.f32 %v645_v61, %v645_v61  ;;  %v669_v12 = vadd.f32 %v665_v5, %v661_v10  ;;  %819 = vmatpush.msra.mxu2 %v808_v33  ;;  %v862_v58 = vld [vmem:[#allocation7 + $0x68] sm:$0xff]  ;;  %v857_v5 = vld [vmem:[#allocation7 + $0x40] sm:$0xff] }
  0xcd   : > { %v686_v57 = vmul.f32 %v1201_v54, %v678_v53  ;;  %774 = vmatpush.msra.mxu1 %v747_v18  ;;  %v798_v53 = vld [vmem:[#allocation6 + $0x10] sm:$0xff] }
  0xce   : > { %v687_v7 = vmul.f32 %v1201_v54, %v679_v0  ;;  %v653_v9 = vmul.f32 %v649_v3, %v649_v3  ;;  %v673_v17 = vadd.f32 3.0, %v669_v12  ;;  %820 = vmatpush.msra.mxu2 %v807_v35  ;;  %v860_v0 = vld [vmem:[#allocation7 + $0x58] sm:$0xff]  ;;  %v853_v12 = vld [vmem:[#allocation7 + $0x20] sm:$0xff]  ;;  %v851_v18 = vld [vmem:[#allocation7 + $0x10] sm:$0xff] }
  0xcf   : > { %726 = vmatmul.f32.vlgmr.msra.gmra.mxu0 %v686_v57  ;;  %775 = vmatpush.msra.mxu1 %v746_v22  ;;  %v863_v57 = vld [vmem:[#allocation7 + $0x70] sm:$0xff]  ;;  %v1592_v22 = vld [vmem:[%s1620_s8] ss:$0 sm:$0xff] }
  0xd0   : > { %v657_v15 = vmul.f32 %v653_v9, %v649_v3  ;;  %821 = vmatpush.msra.mxu2 %v806_v36  ;;  %870 = vmatpush.msra.mxu3 %v863_v57  ;;  %v854_v9 = vld [vmem:[#allocation7 + $0x28] sm:$0xff]  ;;  %v909_v36 = vld [vmem:[#allocation9 + $0x38] sm:$0xff] }
  0xd1   : > { %776 = vmatpush.msra.mxu1 %v745_v24  ;;  %v915_v24 = vld [vmem:[#allocation9 + $0x68] sm:$0xff] }
  0xd2   : > { %v677_v20 = vmul.f32 %v673_v17, %v657_v15  ;;  %822 = vmatpush.msra.mxu2 %v805_v37  ;;  %871 = vmatpush.msra.mxu3 %v862_v58  ;;  %v908_v37 = vld [vmem:[#allocation9 + $0x30] sm:$0xff] }
  0xd3   : > { %777 = vmatpush.msra.mxu1 %v744_v25 }
  0xd4   : > { %v681_v59 = vmul.f32 0.33333334, %v677_v20  ;;  %823 = vmatpush.msra.mxu2 %v804_v40  ;;  %872 = vmatpush.msra.mxu3 %v861_v62  ;;  %v849_v20 = vld [vmem:[#allocation7] sm:$0xff] }
  0xd5   : > { %778 = vmatpush.msra.mxu1 %v743_v26 }
  0xd6   : > { %v689_v23 = vmul.f32 %v1201_v54, %v681_v59  ;;  %824 = vmatpush.msra.mxu2 %v803_v42  ;;  %v797_v54 = vld [vmem:[#allocation6 + $0x8] sm:$0xff]  ;;  %873 = vmatpush.msra.mxu3 %v860_v0  ;;  %v917_v59 = vld [vmem:[#allocation9 + $0x78] sm:$0xff] }
  0xd7   : > { %729 = vmatmul.f32.gmra.mxu0 %v687_v7  ;;  %v856_v7 = vld [vmem:[#allocation7 + $0x38] sm:$0xff]  ;;  %1083 = vmatpush.msrb.mxu1 %v917_v59 }
  0xd8   : > { %825 = vmatpush.msra.mxu2 %v802_v43  ;;  %874 = vmatpush.msra.mxu3 %v859_v1  ;;  %v905_v43 = vld [vmem:[#allocation9 + $0x18] sm:$0xff] }
  0xd9   : > { %922 = vmatpush.msrb.mxu0 %v917_v59 }
  0xda   : > { %826 = vmatpush.msra.mxu2 %v801_v44  ;;  %875 = vmatpush.msra.mxu3 %v858_v2 }
  0xdc   : > { %827 = vmatpush.msra.mxu2 %v800_v48  ;;  %876 = vmatpush.msra.mxu3 %v857_v5  ;;  %v904_v48 = vld [vmem:[#allocation9 + $0x10] sm:$0xff] }
  0xde   : > { %828 = vmatpush.msra.mxu2 %v799_v49  ;;  %877 = vmatpush.msra.mxu3 %v856_v7  ;;  %v902_v49 = vld [vmem:[#allocation9] sm:$0xff] }
  0xdf   : > { %732 = vmatmul.f32.gmra.mxu0 %v688_v19  ;;  %v850_v19 = vld [vmem:[#allocation7 + $0x8] sm:$0xff] }
  0xe0   : > { %829 = vmatpush.msra.mxu2 %v798_v53  ;;  %878 = vmatpush.msra.mxu3 %v855_v8 }
  0xe2   : > { %830 = vmatpush.msra.mxu2 %v797_v54  ;;  %879 = vmatpush.msra.mxu3 %v854_v9 }
  0xe4   : > { %831 = vmatpush.msra.mxu2 %v796_v21  ;;  %880 = vmatpush.msra.mxu3 %v853_v12 }
  0xe6   : > { %881 = vmatpush.msra.mxu3 %v852_v14  ;;  %1084 = vmatpush.msrb.mxu2 %v917_v59 }
  0xe7   : > { %735 = vmatmul.f32.gmra.mxu0 %v689_v23  ;;  %v916_v23 = vld [vmem:[#allocation9 + $0x70] sm:$0xff] }
  0xe8   : > { %882 = vmatpush.msra.mxu3 %v851_v18  ;;  %923 = vmatpush.msrb.mxu0 %v916_v23 }
  0xe9   : > { %1086 = vmatpush.msrb.mxu1 %v916_v23  ;;  %1087 = vmatpush.msrb.mxu2 %v916_v23 }
  0xea   : > { %883 = vmatpush.msra.mxu3 %v850_v19  ;;  %924 = vmatpush.msrb.mxu0 %v915_v24 }
  0xeb   : > { %1089 = vmatpush.msrb.mxu1 %v915_v24  ;;  %1090 = vmatpush.msrb.mxu2 %v915_v24 }
  0xec   : > { %884 = vmatpush.msra.mxu3 %v849_v20 }
  0xee   : > { %1085 = vmatpush.msrb.mxu3 %v917_v59 }
  0xf0   : > { %1088 = vmatpush.msrb.mxu3 %v916_v23 }
  0xf2   : > { %1091 = vmatpush.msrb.mxu3 %v915_v24 }
 0x14c   : > { %v727_v31 = vpop.f32.mrf.mxu0 }
 0x14d   : > { %v728_v32 = vadd.f32 %v1202_v27, %v727_v31  ;;  %v911_v31 = vld [vmem:[#allocation9 + $0x48] sm:$0xff] }
 0x14f   : > { %v739_v34 = vmax.f32 %v728_v32, 0.0 }
 0x151   : > { %779 = vmatmul.f32.vlgmr.msra.gmra.mxu1 %v739_v34  ;;  %v910_v34 = vld [vmem:[#allocation9 + $0x40] sm:$0xff] }
 0x154   : > { %v730_v38 = vpop.f32.mrf.mxu0 }
 0x155   : > { %v731_v39 = vadd.f32 %v1202_v27, %v730_v38  ;;  %v907_v38 = vld [vmem:[#allocation9 + $0x28] sm:$0xff] }
 0x157   : > { %v740_v41 = vmax.f32 %v731_v39, 0.0 }
 0x159   : > { %782 = vmatmul.f32.gmra.mxu1 %v740_v41  ;;  %v906_v41 = vld [vmem:[#allocation9 + $0x20] sm:$0xff] }
 0x15c   : > { %v733_v45 = vpop.f32.mrf.mxu0 }
 0x15d   : > { %v734_v46 = vadd.f32 %v1202_v27, %v733_v45 }
 0x15f   : > { %v741_v47 = vmax.f32 %v734_v46, 0.0 }
 0x161   : > { %785 = vmatmul.f32.gmra.mxu1 %v741_v47  ;;  %v903_v47 = vld [vmem:[#allocation9 + $0x8] sm:$0xff] }
 0x164   : > { %v736_v50 = vpop.f32.mrf.mxu0 }
 0x165   : > { %v737_v51 = vadd.f32 %v1202_v27, %v736_v50  ;;  %v914_v27 = vld [vmem:[#allocation9 + $0x60] sm:$0xff] }
 0x166   : > { %925 = vmatpush.msrb.mxu0 %v914_v27  ;;  %1092 = vmatpush.msrb.mxu1 %v914_v27  ;;  %v1205_v50 = vld [vmem:[%s1622_s10] ss:$0 sm:$0xff] }
 0x167   : > { %v742_v52 = vmax.f32 %v737_v51, 0.0  ;;  %1093 = vmatpush.msrb.mxu2 %v914_v27  ;;  %1094 = vmatpush.msrb.mxu3 %v914_v27 }
 0x168   : > { %926 = vmatpush.msrb.mxu0 %v913_v29  ;;  %1095 = vmatpush.msrb.mxu1 %v913_v29 }
 0x169   : > { %788 = vmatmul.f32.gmra.mxu1 %v742_v52  ;;  %1096 = vmatpush.msrb.mxu2 %v913_v29 }
 0x16a   : > { %927 = vmatpush.msrb.mxu0 %v912_v30  ;;  %1098 = vmatpush.msrb.mxu1 %v912_v30 }
 0x16b   : > { %1099 = vmatpush.msrb.mxu2 %v912_v30  ;;  %1097 = vmatpush.msrb.mxu3 %v913_v29 }
 0x16c   : > { %928 = vmatpush.msrb.mxu0 %v911_v31  ;;  %1101 = vmatpush.msrb.mxu1 %v911_v31 }
 0x16d   : > { %1102 = vmatpush.msrb.mxu2 %v911_v31  ;;  %1100 = vmatpush.msrb.mxu3 %v912_v30 }
 0x16e   : > { %929 = vmatpush.msrb.mxu0 %v910_v34  ;;  %1104 = vmatpush.msrb.mxu1 %v910_v34 }
 0x16f   : > { %1105 = vmatpush.msrb.mxu2 %v910_v34  ;;  %1103 = vmatpush.msrb.mxu3 %v911_v31 }
 0x170   : > { %930 = vmatpush.msrb.mxu0 %v909_v36  ;;  %1107 = vmatpush.msrb.mxu1 %v909_v36 }
 0x171   : > { %1108 = vmatpush.msrb.mxu2 %v909_v36  ;;  %1106 = vmatpush.msrb.mxu3 %v910_v34 }
 0x172   : > { %931 = vmatpush.msrb.mxu0 %v908_v37  ;;  %1110 = vmatpush.msrb.mxu1 %v908_v37 }
 0x173   : > { %1111 = vmatpush.msrb.mxu2 %v908_v37  ;;  %1109 = vmatpush.msrb.mxu3 %v909_v36 }
 0x174   : > { %932 = vmatpush.msrb.mxu0 %v907_v38  ;;  %1113 = vmatpush.msrb.mxu1 %v907_v38 }
 0x175   : > { %1114 = vmatpush.msrb.mxu2 %v907_v38  ;;  %1112 = vmatpush.msrb.mxu3 %v908_v37 }
 0x176   : > { %933 = vmatpush.msrb.mxu0 %v906_v41  ;;  %1116 = vmatpush.msrb.mxu1 %v906_v41 }
 0x177   : > { %1117 = vmatpush.msrb.mxu2 %v906_v41  ;;  %1115 = vmatpush.msrb.mxu3 %v907_v38 }
 0x178   : > { %934 = vmatpush.msrb.mxu0 %v905_v43  ;;  %1119 = vmatpush.msrb.mxu1 %v905_v43 }
 0x179   : > { %1120 = vmatpush.msrb.mxu2 %v905_v43  ;;  %1118 = vmatpush.msrb.mxu3 %v906_v41 }
 0x17a   : > { %935 = vmatpush.msrb.mxu0 %v904_v48  ;;  %1122 = vmatpush.msrb.mxu1 %v904_v48 }
 0x17b   : > { %1121 = vmatpush.msrb.mxu3 %v905_v43  ;;  %1123 = vmatpush.msrb.mxu2 %v904_v48 }
 0x17c   : > { %936 = vmatpush.msrb.mxu0 %v903_v47  ;;  %1125 = vmatpush.msrb.mxu1 %v903_v47 }
 0x17d   : > { %1124 = vmatpush.msrb.mxu3 %v904_v48  ;;  %1126 = vmatpush.msrb.mxu2 %v903_v47 }
 0x17e   : > { %937 = vmatpush.msrb.mxu0 %v902_v49  ;;  %1128 = vmatpush.msrb.mxu1 %v902_v49 }
 0x17f   : > { %1127 = vmatpush.msrb.mxu3 %v903_v47  ;;  %1129 = vmatpush.msrb.mxu2 %v902_v49 }
 0x181   : > { %1130 = vmatpush.msrb.mxu3 %v902_v49 }
 0x1ce   : > { %v780_v60 = vpop.f32.mrf.mxu1 }
 0x1cf   : > { %v781_v61 = vadd.f32 %v1203_v55, %v780_v60 }
 0x1d1   : > { %v792_v63 = vmax.f32 %v781_v61, 0.0 }
 0x1d3   : > { %832 = vmatmul.f32.vlgmr.msra.gmra.mxu2 %v792_v63  ;;  %v1206_v63 = vld [vmem:[%s1624_s12] ss:$0 sm:$0xff] }
 0x1d6   : > { %v783_v3 = vpop.f32.mrf.mxu1 }
 0x1d7   : > { %v784_v4 = vadd.f32 %v1203_v55, %v783_v3 }
 0x1d9   : > { %v793_v6 = vmax.f32 %v784_v4, 0.0 }
 0x1db   : > { %835 = vmatmul.f32.gmra.mxu2 %v793_v6 }
 0x1de   : > { %v786_v10 = vpop.f32.mrf.mxu1 }
 0x1df   : > { %v787_v11 = vadd.f32 %v1203_v55, %v786_v10 }
 0x1e1   : > { %v794_v13 = vmax.f32 %v787_v11, 0.0 }
 0x1e3   : > { %838 = vmatmul.f32.gmra.mxu2 %v794_v13 }
 0x1e6   : > { %v789_v15 = vpop.f32.mrf.mxu1 }
 0x1e7   : > { %v790_v16 = vadd.f32 %v1203_v55, %v789_v15 }
 0x1e9   : > { %v795_v17 = vmax.f32 %v790_v16, 0.0 }
 0x1eb   : > { %841 = vmatmul.f32.gmra.mxu2 %v795_v17 }
 0x256   : > { %v833_v25 = vpop.f32.mrf.mxu2 }
 0x257   : > { %v834_v26 = vadd.f32 %v1592_v22, %v833_v25 }
 0x259   : > { %v845_v28 = vmax.f32 %v834_v26, 0.0 }
 0x25b   : > { %885 = vmatmul.f32.vlgmr.msra.gmra.mxu3 %v845_v28 }
 0x25e   : > { %v836_v32 = vpop.f32.mrf.mxu2 }
 0x25f   : > { %v837_v33 = vadd.f32 %v1592_v22, %v836_v32 }
 0x261   : > { %v846_v35 = vmax.f32 %v837_v33, 0.0 }
 0x263   : > { %888 = vmatmul.f32.gmra.mxu3 %v846_v35 }
 0x266   : > { %v839_v39 = vpop.f32.mrf.mxu2 }
 0x267   : > { %v840_v40 = vadd.f32 %v1592_v22, %v839_v39 }
 0x269   : > { %v847_v42 = vmax.f32 %v840_v40, 0.0 }
 0x26b   : > { %891 = vmatmul.f32.gmra.mxu3 %v847_v42 }
 0x26e   : > { %v842_v44 = vpop.f32.mrf.mxu2 }
 0x26f   : > { %v843_v45 = vadd.f32 %v1592_v22, %v842_v44 }
 0x271   : > { %v848_v46 = vmax.f32 %v843_v45, 0.0 }
 0x273   : > { %894 = vmatmul.f32.gmra.mxu3 %v848_v46 }
 0x2de   : > { %v886_v51 = vpop.f32.mrf.mxu3 }
 0x2df   : > { %v887_v52 = vadd.f32 %v1205_v50, %v886_v51 }
 0x2e1   : > { %v898_v53 = vmax.f32 %v887_v52, 0.0 }
 0x2e3   : > { %938 = vmatmul.f32.vlgmr.msrb.gmra.mxu0 %v898_v53 }
 0x2e6   : > { %v889_v54 = vpop.f32.mrf.mxu3 }
 0x2e7   : > { %v890_v21 = vadd.f32 %v1205_v50, %v889_v54 }
 0x2e9   : > { %v899_v55 = vmax.f32 %v890_v21, 0.0 }
 0x2eb   : > { %941 = vmatmul.f32.vlgmr.msrb.gmra.mxu1 %v899_v55 }
 0x2ee   : > { %v892_v56 = vpop.f32.mrf.mxu3 }
 0x2ef   : > { %v893_v57 = vadd.f32 %v1205_v50, %v892_v56 }
 0x2f1   : > { %v900_v58 = vmax.f32 %v893_v57, 0.0 }
 0x2f3   : > { %944 = vmatmul.f32.vlgmr.msrb.gmra.mxu2 %v900_v58 }
 0x2f6   : > { %v895_v60 = vpop.f32.mrf.mxu3 }
 0x2f7   : > { %v896_v61 = vadd.f32 %v1205_v50, %v895_v60 }
 0x2f9   : > { %v901_v62 = vmax.f32 %v896_v61, 0.0 }
 0x2fb   : > { %947 = vmatmul.f32.vlgmr.msrb.gmra.mxu3 %v901_v62 }
 0x360   : > { %v939_v0 = vpop.f32.mrf.mxu0 }
 0x361   : > { %v940_v1 = vadd.f32 %v1206_v63, %v939_v0 }
 0x363   : > { %952 = vst.msk [vmem:[%s525_s20] sm:$0xff] %vm951_vm8, %v940_v1 }
 0x368   : > { %v942_v2 = vpop.f32.mrf.mxu1 }
 0x369   : > { %v943_v3 = vadd.f32 %v1206_v63, %v942_v2 }
 0x36b   : > { %953 = vst.msk [vmem:[%s525_s20 + $0x8] sm:$0xff] %vm951_vm8, %v943_v3 }
 0x376   : > { %v945_v4 = vpop.f32.mrf.mxu2 }
 0x377   : > { %v946_v5 = vadd.f32 %v1206_v63, %v945_v4 }
 0x379   : > { %954 = vst.msk [vmem:[%s525_s20 + $0x10] sm:$0xff] %vm951_vm8, %v946_v5 }
 0x37e   : > { %v948_v6 = vpop.f32.mrf.mxu3 }
 0x37f   : > { %v949_v7 = vadd.f32 %v1206_v63, %v948_v6 }
 0x381   : > { %955 = vst.msk [vmem:[%s525_s20 + $0x18] sm:$0xff] %vm951_vm8, %v949_v7 }
 0x382 PF: > { %s26_s25 = sadd.s32 1, %s1383_s25  }
 0x383   : > { %p23_p7 = scmp.ge.s32.totalorder %s26_s25, 4  }
 0x385   :  { %25 = sbr.rel (!%p23_p7) target bundleno = 7 (0x7), region = 123 }
 0x38a   :  { %978 = vsyncpa [#allocation3], 1 }
 0x38b   :  { %980 = vsyncpa [#allocation3 + $0x1], 1 }
 0x38c   :  { %981 = vsyncpa [#allocation5], 1 }
 0x38d   :  { %982 = vsyncpa [#allocation8], 1 }

</bundles_post_ra>
